<compile_context>
chip_gen: v6e
topology: v6e:2x2x1
jax: 0.10.0
libtpu: 0.0.40
codegen_flags: <defaults>
</compile_context>

<pallas_src>
import jax
import jax.numpy as jnp
from jax.experimental import pallas as pl
from jax.experimental.pallas import tpu as pltpu


def tail_kernel(w_ref, b_ref, x_ref, o_ref):
    # w_ref: (C_out, C_in)   BN-scale-folded conv weight (bf16), resident across the grid
    # b_ref: (C_out, 1)      folded BN bias (f32), broadcast over the lane (L) axis
    # x_ref: (1, C_in, TL)   activation tile in native NCL layout (f32 straight from HBM)
    # o_ref: (1, C_out, TL)  output tile (f32)
    x = x_ref[0].astype(w_ref.dtype)                                  # (C_in, TL), f32 -> bf16 (free, mem-bound)
    y = jnp.dot(w_ref[...], x, preferred_element_type=jnp.float32)    # (C_out, TL), f32 MXU accumulation
    y = y + b_ref[...]                                                # folded BN bias
    y = jnp.maximum(y, 0.2 * y)                                       # LeakyReLU(0.2)
    o_ref[0] = y.astype(o_ref.dtype)


def _pick_tl(l):
    # Lane-dense tile along L: largest multiple of 128 up to 2048; full L when L < 128
    # (a block dim equal to the full array dim is always legal, just lane-sparse for tiny L).
    if l < 128:
        return l
    return min(l - (l % 128), 2048)


def tail_forward(x, weight, gamma, beta, running_mean, running_var,
                 eps=1e-5, compute_dtype=jnp.bfloat16, tl=None):
    """x: (N, C_in, L) float32.  weight: (C_out, C_in) (Conv1d k=1 weight with k squeezed)."""
    n, c_in, l = x.shape
    c_out = weight.shape[0]

    # Fold BN (eval mode): scale into the weight; bias applied in-kernel.
    scale = gamma / jnp.sqrt(running_var + eps)                       # (C_out,)
    bias = (beta - running_mean * scale).astype(jnp.float32).reshape(c_out, 1)
    w_scaled = (weight * scale[:, None]).astype(compute_dtype)        # (C_out, C_in), tiny cast

    if tl is None:
        tl = _pick_tl(l)

    grid = (n, pl.cdiv(l, tl))

    y = pl.pallas_call(
        tail_kernel,
        out_shape=jax.ShapeDtypeStruct((n, c_out, l), jnp.float32),
        grid_spec=pltpu.PrefetchScalarGridSpec(
            num_scalar_prefetch=0,
            grid=grid,
            in_specs=[
                pl.BlockSpec((c_out, c_in), lambda i, j: (0, 0)),     # folded weight (resident)
                pl.BlockSpec((c_out, 1), lambda i, j: (0, 0)),        # folded bias   (resident)
                pl.BlockSpec((1, c_in, tl), lambda i, j: (i, 0, j)),  # x tile
            ],
            out_specs=pl.BlockSpec((1, c_out, tl), lambda i, j: (i, 0, j)),
        ),
        compiler_params=pltpu.CompilerParams(
            dimension_semantics=("parallel", "parallel"),
        ),
    )(w_scaled, bias, x)

    return y


def reference_forward(x, weight, gamma, beta, running_mean, running_var, eps=1e-5):
    # Pure-JAX f32 reference: Conv1d(k=1, no bias) + eval-mode BN + LeakyReLU(0.2).
    y = jnp.einsum("oc,ncl->nol", weight, x)
    scale = gamma / jnp.sqrt(running_var + eps)
    bias = beta - running_mean * scale
    y = y * scale[None, :, None] + bias[None, :, None]
    return jnp.where(y > 0, y, 0.2 * y)


if __name__ == "__main__":
    # Module-consistent shapes: in_features=256 (module default), C_out=128; lane-dense L=256.
    N, C_IN, C_OUT, L = 2, 256, 128, 256

    key = jax.random.PRNGKey(0)
    kx, kw, kg, kb, km, kv = jax.random.split(key, 6)

    x = jax.random.normal(kx, (N, C_IN, L), dtype=jnp.float32)

    # Deterministic parameter init (Conv1d weight is (C_out, C_in, 1) in PyTorch; k squeezed here).
    bound = 1.0 / (C_IN ** 0.5)
    weight = jax.random.uniform(kw, (C_OUT, C_IN), jnp.float32, -bound, bound)
    gamma = 1.0 + 0.1 * jax.random.normal(kg, (C_OUT,), jnp.float32)
    beta = 0.1 * jax.random.normal(kb, (C_OUT,), jnp.float32)
    running_mean = 0.05 * jax.random.normal(km, (C_OUT,), jnp.float32)
    running_var = 1.0 + 0.1 * jax.random.uniform(kv, (C_OUT,), jnp.float32)

    out = tail_forward(x, weight, gamma, beta, running_mean, running_var)
    out = jax.block_until_ready(out)

    ref = reference_forward(x, weight, gamma, beta, running_mean, running_var)
    assert out.shape == (N, C_OUT, L)
    # bf16 MXU inputs with f32 accumulation -> relaxed tolerance vs the f32 reference.
    assert jnp.allclose(out, ref, atol=2e-2, rtol=2e-2), "mismatch vs reference"

    print("KERNEL_OK")
</pallas_src>

<mosaic_0001>
module attributes {stable_mosaic.version = 11 : i64} {
  func.func @tail_kernel(%arg0: i32, %arg1: i32, %arg2: memref<128x256xbf16, #tpu.memory_space<vmem>>, %arg3: memref<128x1xf32, #tpu.memory_space<vmem>>, %arg4: memref<1x256x256xf32, #tpu.memory_space<vmem>>, %arg5: memref<1x128x256xf32, #tpu.memory_space<vmem>>) attributes {dimension_semantics = [#tpu.dimension_semantics<parallel>, #tpu.dimension_semantics<parallel>], iteration_bounds = array<i64: 2, 1>, scalar_prefetch = 0 : i64, scratch_operands = 0 : i64, tpu.core_type = #tpu.core_type<tc>, window_params = [{pipeline_mode = #tpu.pipeline_mode<synchronous>, transform_indices = @transform_0, window_bounds = array<i64: 128, 256>}, {pipeline_mode = #tpu.pipeline_mode<synchronous>, transform_indices = @transform_1, window_bounds = array<i64: 128, 1>}, {transform_indices = @transform_2, window_bounds = array<i64: 1, 256, 256>}, {transform_indices = @transform_3, window_bounds = array<i64: 1, 128, 256>}]} {
    %c0 = arith.constant 0 : index
    %c0_0 = arith.constant 0 : index
    %c0_1 = arith.constant 0 : index
    %0 = vector.load %arg4[%c0, %c0_0, %c0_1] : memref<1x256x256xf32, #tpu.memory_space<vmem>>, vector<1x256x256xf32>
    %1 = vector.shape_cast %0 : vector<1x256x256xf32> to vector<256x256xf32>
    %2 = arith.truncf %1 : vector<256x256xf32> to vector<256x256xbf16>
    %c0_2 = arith.constant 0 : index
    %c0_3 = arith.constant 0 : index
    %3 = vector.load %arg2[%c0_2, %c0_3] : memref<128x256xbf16, #tpu.memory_space<vmem>>, vector<128x256xbf16>
    %cst = arith.constant dense<0.000000e+00> : vector<128x256xf32>
    %4 = tpu.matmul %3, %2, %cst {dimension_numbers = #tpu.dot_dimension_numbers<[1], [0], [0], [1], [0, 0, 1, 1], [], []>} : vector<128x256xbf16>, vector<256x256xbf16>, vector<128x256xf32> -> vector<128x256xf32>
    %c0_4 = arith.constant 0 : index
    %c0_5 = arith.constant 0 : index
    %5 = vector.load %arg3[%c0_4, %c0_5] : memref<128x1xf32, #tpu.memory_space<vmem>>, vector<128x1xf32>
    %6 = vector.broadcast %5 : vector<128x1xf32> to vector<128x256xf32>
    %7 = arith.addf %4, %6 : vector<128x256xf32>
    %cst_6 = arith.constant 2.000000e-01 : f32
    %8 = vector.broadcast %cst_6 : f32 to vector<128x256xf32>
    %9 = arith.mulf %8, %7 : vector<128x256xf32>
    %10 = arith.maximumf %7, %9 : vector<128x256xf32>
    %c0_7 = arith.constant 0 : index
    %c0_8 = arith.constant 0 : index
    %c0_9 = arith.constant 0 : index
    %11 = vector.load %arg5[%c0_7, %c0_8, %c0_9] : memref<1x128x256xf32, #tpu.memory_space<vmem>>, vector<1x128x256xf32>
    %12 = vector.shape_cast %11 : vector<1x128x256xf32> to vector<128x256xf32>
    %13 = vector.shape_cast %10 : vector<128x256xf32> to vector<1x128x256xf32>
    tpu.vector_store %arg5[%c0_7, %c0_8, %c0_9], %13 {strides = array<i32>} : memref<1x128x256xf32, #tpu.memory_space<vmem>>, vector<1x128x256xf32>,
    return
  }
  func.func @transform_0(%arg0: i32, %arg1: i32) -> (i32, i32) {
    %c0_i32 = arith.constant 0 : i32
    %c0_i32_0 = arith.constant 0 : i32
    %c0_i32_1 = arith.constant 0 : i32
    return %c0_i32, %c0_i32_0 : i32, i32
  }
  func.func @transform_1(%arg0: i32, %arg1: i32) -> (i32, i32) {
    %c0_i32 = arith.constant 0 : i32
    %c0_i32_0 = arith.constant 0 : i32
    %c0_i32_1 = arith.constant 0 : i32
    return %c0_i32, %c0_i32_0 : i32, i32
  }
  func.func @transform_2(%arg0: i32, %arg1: i32) -> (i32, i32, i32) {
    %c0_i32 = arith.constant 0 : i32
    %c0_i32_0 = arith.constant 0 : i32
    return %arg0, %c0_i32, %arg1 : i32, i32, i32
  }
  func.func @transform_3(%arg0: i32, %arg1: i32) -> (i32, i32, i32) {
    %c0_i32 = arith.constant 0 : i32
    %c0_i32_0 = arith.constant 0 : i32
    return %arg0, %c0_i32, %arg1 : i32, i32, i32
  }
}

</mosaic_0001>

<bundles_post_ra>
// kernel: tpu_custom_call.1
= control target key start
LH: loop header
LB: loop body
LE: loop exit
PB: predicated region body
PF: predicated region fallthrough
CT: control target
= control target key end

     0   :  { %8 = vsyncpa [#allocation3], 0  ;;  %s1468_s0 = inlined_call_operand.vmem [shape: bf16[128,256], index: 0, kind: input, shape index: {}]   ;;  %s1469_s1 = inlined_call_operand.vmem [shape: f32[128,1], index: 1, kind: input, shape index: {}]   ;;  %s1470_s2 = inlined_call_operand.hbm [shape: f32[2,256,256], index: 2, kind: input, shape index: {}]   ;;  %s1471_s3 = inlined_call_operand.hbm [shape: f32[2,128,256], index: 3, kind: output, shape index: {}]  }
   0x1   :  { %10 = vsyncpa [#allocation3 + $0x1], 0 }
   0x2   :  { %11 = vsyncpa [#allocation4], 0 }
   0x3   :  { %13 = vsyncpa [#allocation4 + $0x1], 0  ;;  %s1104_s12 = smov 0   ;;  %s1106_s13 = smov 0  }
   0x4   :  { %s1108_s14 = smov 0   ;;  %s1110_s15 = smov 0  }
   0x5   :  { %s1112_s16 = smov 0   ;;  %s1114_s17 = smov 0  }
   0x6 LB: > { %s809_s18 = sadd.s32 4294967295, %s1075_s17   ;;  %s810_s19 = sadd.s32 4294967294, %s1075_s17   ;;  %s1075_s17 = sphi %s1114_s17, %s19_s17   ;;  %s1071_s16 = sphi %s1112_s16, %s1482_s16   ;;  %s1067_s15 = sphi %s1110_s15, %s1481_s15   ;;  %s1063_s14 = sphi %s1108_s14, %s1480_s14   ;;  %s1059_s13 = sphi %s1106_s13, %s1479_s13   ;;  %s1055_s12 = sphi %s1104_s12, %s1478_s12  }
   0x7   : > { %s31_s20 = sadd.s32 1, %s1071_s16  ;;  %s82_s21 = sadd.s32 1, %s1063_s14 }
   0x8   : > { %p33_p0 = scmp.ge.s32.totalorder %s31_s20, 2  ;;  %p89_p1 = scmp.ne.s32.totalorder %s1063_s14, %s1059_s13 }
   0x9   : > { %p90_p2 = scmp.eq.s32.totalorder %s1075_s17, 0  ;;  %p95_p3 = scmp.ne.s32.totalorder %s1059_s13, %s1055_s12 }
   0xa   : > { %s1484_s20 = smov (%p33_p0, %s31_s20), 0  ;;  %p96_p5 = scmp.eq.s32.totalorder %s809_s18, 0 }
   0xb   : > { %p1145_p4 = por %p90_p2, %p89_p1  ;;  %s77_s23 = ssub.s32 %s1071_s16, %s1484_s20 }
   0xc   : > { %p121_p6 = scmp.eq.s32.totalorder %s809_s18, 1  ;;  %p80_p7 = scmp.eq.s32.totalorder %s77_s23, 0 }
   0xd   : > { %p1151_p8 = por %p96_p5, %p95_p3  ;;  %p127_p10 = scmp.eq.s32.totalorder %s810_s19, 1 }
   0xe   : > { %p1155_p9 = por %p121_p6, %p89_p1  ;;  %p886_p13 = scmp.lt.s32.totalorder %s1075_s17, 2 }
   0xf   : > { %s1160_s26 = scalar_select %p80_p7, %s1063_s14, %s82_s21  }
  0x10   : > { %p1162_p11 = por %p127_p10, %p95_p3  ;;  %s153_s28 = sand.u32 1, %s1063_s14  }
  0x11   : > { %s813_s29 = sshll.u32 %s153_s28, 9  ;;  %s840_s30 = sshll.u32 %s1071_s16, 13 }
  0x12   : > { %s165_s6 = scalar_lea.hbm %s1470_s2, %s840_s30  ;;  %s157_s7 = scalar_lea.vmem [#allocation2], %s813_s29 }
  0x13   : > { %s166_s8 = sshll.u32 %s157_s7, 4  ;;  %p1175_p0 = pnand %p886_p13, %p1145_p4  ;;  %s167_s8 = int_to_ptr.vmem [resolvable:$true] %s166_s8 }
  0x14   : > { %p816_p1 = scmp.ge.s32.totalorder %s1075_s17, 1  ;;  %s154_s10 = scalar_lea.sflag [#allocation3], %s153_s28 }
  0x15   : > { %p969_p2 = pneg %p1175_p0  ;;  %s980_s11 = scalar_lea.vmem %s167_s8, 8192 }
  0x16   : > { %p981_p3 = scmp.ne.s32.totalorder %s167_s8, %s980_s11  ;;  %s1077_s18 = smov [#allocation2]  }
  0x17   : > { %s985_s19 = sshll.u32 %s1077_s18, 4  ;;  %s986_s19 = int_to_ptr.vmem [resolvable:$false] %s985_s19 }
  0x18   : > { %p983_p5 = pnand %p981_p3, %p969_p2  ;;  %s987_s21 = scalar_lea.vmem %s986_s19, 16384 }
  0x19   : > { %p988_p7 = scmp.lt.s32.totalorder %s167_s8, %s986_s19  ;;  %p989_p10 = scmp.lt.s32.totalorder %s987_s21, %s980_s11 }
  0x1a   : > { %p984_p6 = pneg %p983_p5 }
  0x1b   : > { %p990_p12 = por %p989_p10, %p988_p7 }
  0x1d   : > { %p991_p4 = pnand %p990_p12, %p984_p6 }
  0x1f   : > { %994 = shalt.err (!%p991_p4)
}
  0x20   : > { %s1078_s22 = smov 256   ;;  %s1079_s23 = smov 16  }
  0x21   : > { %881 = dma.hbm_to_vmem [thread:$0]  (!%p1175_p0), %s165_s6, 8192, %s167_s8, %s154_s10, %s1078_s22, %s1078_s22, %s1079_s23  }
  0x22   : > { %p174_p13 = scmp.lt.s32.totalorder %s1075_s17, 3 }
  0x24   : > { %p175_p2 = pnand %p816_p1, %p174_p13 }
  0x25   : > { %s1188_s28 = sand.u32 (!%p175_p2), 1, %s1059_s13  }
  0x26   : > { %178 = sbr.rel (%p175_p2) target bundleno = 355 (0x163), region = 32  ;;  %s817_s29 = sshll.u32 (!%p175_p2), %s1188_s28, 9 }
  0x27   : > { %s181_s30 = scalar_lea.sflag (!%p175_p2), [#allocation3], %s1188_s28  ;;  %s1192_s4 = scalar_lea.vmem (!%p175_p2), [#allocation2], %s817_s29 }
  0x2b   : > { %1046 = dma.done.wait (%p1151_p8), %s181_s30, 8192  }
  0x2c   : > { %1048 = vsyncadd (%p1151_p8), %s181_s30, 4294959104  ;;  %v1080_v0 = vmov 0   ;;  %v238_v1 = vld [vmem:[%s1192_s4 + $0xe8] sm:$0xff]  ;;  %v240_v2 = vld [vmem:[%s1192_s4 + $0xf8] sm:$0xff]  ;;  %s818_s6 = sshll.u32 %s1188_s28, 8  ;;  %s841_s8 = sshll.u32 %s1067_s15, 12 }
  0x2d   : > { %942 = vset.pattern.permute.xlu1 %v1080_v0  ;;  %941 = vset.pattern.permute.xlu0 %v1080_v0  ;;  %v237_v3 = vld [vmem:[%s1192_s4 + $0xe0] sm:$0xff]  ;;  %v288_v4 = vpack.c.bf16 %v240_v2, %v238_v1  ;;  %v239_v5 = vld [vmem:[%s1192_s4 + $0xf0] sm:$0xff]  ;;  %v234_v6 = vld [vmem:[%s1192_s4 + $0xc8] sm:$0xff]  ;;  %s1369_s7 = scalar_lea.vmem [#allocation5], %s818_s6  ;;  %s707_s15 = scalar_lea.sflag [#allocation4], %s1188_s28 }
  0x2e   : > { %v236_v7 = vld [vmem:[%s1192_s4 + $0xd8] sm:$0xff]  ;;  %v287_v8 = vpack.c.bf16 %v239_v5, %v237_v3  ;;  %v233_v10 = vld [vmem:[%s1192_s4 + $0xc0] sm:$0xff]  ;;  %v235_v11 = vld [vmem:[%s1192_s4 + $0xd0] sm:$0xff]  ;;  %s722_s9 = sshll.u32 %s1369_s7, 4  ;;  %s1081_s19 = smov [#allocation5]   ;;  %s1416_s9 = int_to_ptr.vmem [resolvable:$true] %s722_s9 }
  0x2f   : > { %v286_v9 = vpack.c.bf16 %v236_v7, %v234_v6  ;;  %v230_v12 = vld [vmem:[%s1192_s4 + $0xa8] sm:$0xff]  ;;  %497 = vmatprep.subr.bf16.mxu0 %v288_v4  ;;  %842 = vmatprep.subr.bf16.mxu1 %v288_v4  ;;  %v232_v13 = vld [vmem:[%s1192_s4 + $0xb8] sm:$0xff]  ;;  %v285_v14 = vpack.c.bf16 %v235_v11, %v233_v10  ;;  %v229_v16 = vld [vmem:[%s1192_s4 + $0xa0] sm:$0xff]  ;;  %s995_s18 = scalar_lea.vmem %s1416_s9, 4096  ;;  %s999_s21 = sshll.u32 %s1081_s19, 4  ;;  %s1000_s21 = int_to_ptr.vmem [resolvable:$false] %s999_s21 }
  0x30   : > { %498 = vmatpush1.bf16.msra.mxu0 %v287_v8  ;;  %858 = vmatpush1.bf16.msra.mxu1 %v287_v8  ;;  %v284_v15 = vpack.c.bf16 %v232_v13, %v230_v12  ;;  %v231_v17 = vld [vmem:[%s1192_s4 + $0xb0] sm:$0xff]  ;;  %v226_v18 = vld [vmem:[%s1192_s4 + $0x88] sm:$0xff]  ;;  %v228_v19 = vld [vmem:[%s1192_s4 + $0x98] sm:$0xff]  ;;  %p996_p8 = scmp.ne.s32.totalorder %s1416_s9, %s995_s18  ;;  %s1001_s22 = scalar_lea.vmem %s1000_s21, 8192 }
  0x31   : > { %499 = vmatprep.subr.bf16.mxu0 %v286_v9  ;;  %843 = vmatprep.subr.bf16.mxu1 %v286_v9  ;;  %v283_v20 = vpack.c.bf16 %v231_v17, %v229_v16  ;;  %v282_v21 = vpack.c.bf16 %v228_v19, %v226_v18  ;;  %v225_v22 = vld [vmem:[%s1192_s4 + $0x80] sm:$0xff]  ;;  %v227_v23 = vld [vmem:[%s1192_s4 + $0x90] sm:$0xff]  ;;  %v222_v24 = vld [vmem:[%s1192_s4 + $0x68] sm:$0xff]  ;;  %p1002_p1 = scmp.lt.s32.totalorder %s1416_s9, %s1000_s21  ;;  %p1003_p3 = scmp.lt.s32.totalorder %s1001_s22, %s995_s18 }
  0x32   : > { %v224_v25 = vld [vmem:[%s1192_s4 + $0x78] sm:$0xff]  ;;  %v281_v26 = vpack.c.bf16 %v227_v23, %v225_v22  ;;  %v221_v28 = vld [vmem:[%s1192_s4 + $0x60] sm:$0xff]  ;;  %v223_v29 = vld [vmem:[%s1192_s4 + $0x70] sm:$0xff]  ;;  %p997_p12 = pnand %p996_p8, %p1155_p9 }
  0x33   : > { %v280_v27 = vpack.c.bf16 %v224_v25, %v222_v24  ;;  %v218_v30 = vld [vmem:[%s1192_s4 + $0x48] sm:$0xff]  ;;  %v220_v31 = vld [vmem:[%s1192_s4 + $0x58] sm:$0xff]  ;;  %v279_v32 = vpack.c.bf16 %v223_v29, %v221_v28  ;;  %v217_v34 = vld [vmem:[%s1192_s4 + $0x40] sm:$0xff]  ;;  %p1004_p5 = por %p1003_p3, %p1002_p1 }
  0x34   : > { %500 = vmatpush1.bf16.msra.mxu0 %v285_v14  ;;  %859 = vmatpush1.bf16.msra.mxu1 %v285_v14  ;;  %v278_v33 = vpack.c.bf16 %v220_v31, %v218_v30  ;;  %v219_v35 = vld [vmem:[%s1192_s4 + $0x50] sm:$0xff]  ;;  %v214_v36 = vld [vmem:[%s1192_s4 + $0x28] sm:$0xff]  ;;  %v216_v37 = vld [vmem:[%s1192_s4 + $0x38] sm:$0xff]  ;;  %p998_p0 = pneg %p997_p12 }
  0x35   : > { %501 = vmatprep.subr.bf16.mxu0 %v284_v15  ;;  %844 = vmatprep.subr.bf16.mxu1 %v284_v15  ;;  %v277_v38 = vpack.c.bf16 %v219_v35, %v217_v34  ;;  %v213_v39 = vld [vmem:[%s1192_s4 + $0x20] sm:$0xff]  ;;  %v215_v40 = vld [vmem:[%s1192_s4 + $0x30] sm:$0xff]  ;;  %v276_v41 = vpack.c.bf16 %v216_v37, %v214_v36  ;;  %v210_v42 = vld [vmem:[%s1192_s4 + $0x8] sm:$0xff] }
  0x36   : > { %v212_v43 = vld [vmem:[%s1192_s4 + $0x18] sm:$0xff]  ;;  %v945_v44 = vld [vmem:[%s1468_s0 + $0x4] ss:$8 sps:$4 sm:$0xff]   ;;  %v275_v46 = vpack.c.bf16 %v215_v40, %v213_v39  ;;  %v211_v49 = vld [vmem:[%s1192_s4 + $0x10] sm:$0xff]  ;;  %p1005_p6 = pnand %p1004_p5, %p998_p0 }
  0x37   : > { %v948_v45 = vld [vmem:[%s1468_s0 + $0x44] ss:$8 sps:$4 sm:$0xff]   ;;  %v274_v48 = vpack.c.bf16 %v212_v43, %v210_v42  ;;  %v272_v51 = vld [vmem:[%s1192_s4 + $0x1f8] sm:$0xff]  ;;  %529 = vmatprep.mubr.bf16.mxu0 %v945_v44  ;;  %v271_v54 = vld [vmem:[%s1192_s4 + $0x1f0] sm:$0xff] }
  0x38   : > { %502 = vmatpush1.bf16.msra.mxu0 %v283_v20  ;;  %860 = vmatpush1.bf16.msra.mxu1 %v283_v20  ;;  %v209_v47 = vld [vmem:[%s1192_s4] sm:$0xff]  ;;  %v270_v50 = vld [vmem:[%s1192_s4 + $0x1e8] sm:$0xff]  ;;  %v268_v57 = vld [vmem:[%s1192_s4 + $0x1d8] sm:$0xff] }
  0x39   : > { %503 = vmatprep.subr.bf16.mxu0 %v282_v21  ;;  %845 = vmatprep.subr.bf16.mxu1 %v282_v21  ;;  %v273_v52 = vpack.c.bf16 %v211_v49, %v209_v47  ;;  %v269_v53 = vld [vmem:[%s1192_s4 + $0x1e0] sm:$0xff]  ;;  %v304_v55 = vpack.c.bf16 %v272_v51, %v270_v50  ;;  %v266_v56 = vld [vmem:[%s1192_s4 + $0x1c8] sm:$0xff]  ;;  %v323_v59 = vld [vmem:[%s1469_s1 + $0x10] sm:$0xff] }
  0x3a   : > { %569 = vmatprep.mubr.bf16.mxu1 %v948_v45  ;;  %v303_v58 = vpack.c.bf16 %v271_v54, %v269_v53  ;;  %v321_v60 = vld [vmem:[%s1469_s1] sm:$0xff]  ;;  %v302_v61 = vpack.c.bf16 %v268_v57, %v266_v56  ;;  %v267_v63 = vld [vmem:[%s1192_s4 + $0x1d0] sm:$0xff]  ;;  %v262_v0 = vld [vmem:[%s1192_s4 + $0x1a8] sm:$0xff]  ;;  %349 = vperm.xlu1 %942, %v323_v59  }
  0x3b   : > { %v265_v62 = vld [vmem:[%s1192_s4 + $0x1c0] sm:$0xff]  ;;  %v264_v1 = vld [vmem:[%s1192_s4 + $0x1b8] sm:$0xff]  ;;  %339 = vperm.xlu0 %941, %v321_v60   ;;  %v322_v3 = vld [vmem:[%s1469_s1 + $0x8] sm:$0xff] }
  0x3c   : > { %504 = vmatpush1.bf16.msra.mxu0 %v281_v26  ;;  %861 = vmatpush1.bf16.msra.mxu1 %v281_v26  ;;  %v324_v2 = vld [vmem:[%s1469_s1 + $0x18] sm:$0xff]  ;;  %v301_v4 = vpack.c.bf16 %v267_v63, %v265_v62  ;;  %v300_v5 = vpack.c.bf16 %v264_v1, %v262_v0  ;;  %v261_v6 = vld [vmem:[%s1192_s4 + $0x1a0] sm:$0xff]  ;;  %v263_v7 = vld [vmem:[%s1192_s4 + $0x1b0] sm:$0xff] }
  0x3d   : > { %505 = vmatprep.subr.bf16.mxu0 %v280_v27  ;;  %846 = vmatprep.subr.bf16.mxu1 %v280_v27  ;;  %v258_v8 = vld [vmem:[%s1192_s4 + $0x188] sm:$0xff]  ;;  %v260_v9 = vld [vmem:[%s1192_s4 + $0x198] sm:$0xff]  ;;  %v325_v11 = vld [vmem:[%s1469_s1 + $0x20] sm:$0xff]  ;;  %v299_v12 = vpack.c.bf16 %v263_v7, %v261_v6 }
  0x3e   : > { %354 = vperm.xlu1 %942, %v324_v2   ;;  %v326_v10 = vld [vmem:[%s1469_s1 + $0x28] sm:$0xff]  ;;  %v298_v13 = vpack.c.bf16 %v260_v9, %v258_v8  ;;  %v257_v14 = vld [vmem:[%s1192_s4 + $0x180] sm:$0xff]  ;;  %v259_v15 = vld [vmem:[%s1192_s4 + $0x190] sm:$0xff] }
  0x3f   : > { %344 = vperm.xlu0 %941, %v322_v3   ;;  %v254_v16 = vld [vmem:[%s1192_s4 + $0x168] sm:$0xff]  ;;  %v256_v17 = vld [vmem:[%s1192_s4 + $0x178] sm:$0xff]  ;;  %v327_v19 = vld [vmem:[%s1469_s1 + $0x30] sm:$0xff]  ;;  %v297_v20 = vpack.c.bf16 %v259_v15, %v257_v14 }
  0x40   : > { %506 = vmatpush1.bf16.msra.mxu0 %v279_v32  ;;  %862 = vmatpush1.bf16.msra.mxu1 %v279_v32  ;;  %v328_v18 = vld [vmem:[%s1469_s1 + $0x38] sm:$0xff]  ;;  %v296_v21 = vpack.c.bf16 %v256_v17, %v254_v16  ;;  %v253_v22 = vld [vmem:[%s1192_s4 + $0x160] sm:$0xff]  ;;  %v255_v23 = vld [vmem:[%s1192_s4 + $0x170] sm:$0xff] }
  0x41   : > { %507 = vmatprep.subr.bf16.mxu0 %v278_v33  ;;  %847 = vmatprep.subr.bf16.mxu1 %v278_v33  ;;  %v250_v24 = vld [vmem:[%s1192_s4 + $0x148] sm:$0xff]  ;;  %v252_v25 = vld [vmem:[%s1192_s4 + $0x158] sm:$0xff]  ;;  %v329_v27 = vld [vmem:[%s1469_s1 + $0x40] sm:$0xff]  ;;  %v295_v28 = vpack.c.bf16 %v255_v23, %v253_v22 }
  0x42   : > { %364 = vperm.xlu1 %942, %v326_v10   ;;  %v330_v26 = vld [vmem:[%s1469_s1 + $0x48] sm:$0xff]  ;;  %v294_v29 = vpack.c.bf16 %v252_v25, %v250_v24  ;;  %v249_v30 = vld [vmem:[%s1192_s4 + $0x140] sm:$0xff]  ;;  %v251_v31 = vld [vmem:[%s1192_s4 + $0x150] sm:$0xff] }
  0x43   : > { %359 = vperm.xlu0 %941, %v325_v11   ;;  %v246_v32 = vld [vmem:[%s1192_s4 + $0x128] sm:$0xff]  ;;  %v248_v33 = vld [vmem:[%s1192_s4 + $0x138] sm:$0xff]  ;;  %v331_v35 = vld [vmem:[%s1469_s1 + $0x50] sm:$0xff]  ;;  %v293_v36 = vpack.c.bf16 %v251_v31, %v249_v30 }
  0x44   : > { %508 = vmatpush1.bf16.msra.mxu0 %v277_v38  ;;  %863 = vmatpush1.bf16.msra.mxu1 %v277_v38  ;;  %v332_v34 = vld [vmem:[%s1469_s1 + $0x58] sm:$0xff]  ;;  %v292_v37 = vpack.c.bf16 %v248_v33, %v246_v32  ;;  %v245_v38 = vld [vmem:[%s1192_s4 + $0x120] sm:$0xff]  ;;  %v247_v39 = vld [vmem:[%s1192_s4 + $0x130] sm:$0xff] }
  0x45   : > { %509 = vmatprep.subr.bf16.mxu0 %v276_v41  ;;  %848 = vmatprep.subr.bf16.mxu1 %v276_v41  ;;  %v242_v40 = vld [vmem:[%s1192_s4 + $0x108] sm:$0xff]  ;;  %v244_v41 = vld [vmem:[%s1192_s4 + $0x118] sm:$0xff]  ;;  %v333_v43 = vld [vmem:[%s1469_s1 + $0x60] sm:$0xff]  ;;  %v291_v44 = vpack.c.bf16 %v247_v39, %v245_v38 }
  0x46   : > { %374 = vperm.xlu1 %942, %v328_v18   ;;  %v334_v42 = vld [vmem:[%s1469_s1 + $0x68] sm:$0xff]  ;;  %v290_v45 = vpack.c.bf16 %v244_v41, %v242_v40  ;;  %v243_v47 = vld [vmem:[%s1192_s4 + $0x110] sm:$0xff] }
  0x47   : > { %369 = vperm.xlu0 %941, %v327_v19   ;;  %v335_v49 = vld [vmem:[%s1469_s1 + $0x70] sm:$0xff]  ;;  %v943_v51 = vld [vmem:[%s1468_s0] ss:$8 sps:$4 sm:$0xff]   ;;  %v955_v57 = vld [vmem:[%s1468_s0 + $0x24] ss:$8 sps:$4 sm:$0xff]  }
  0x48   : > { %510 = vmatpush1.bf16.msra.mxu0 %v275_v46  ;;  %864 = vmatpush1.bf16.msra.mxu1 %v275_v46  ;;  %v241_v46 = vld [vmem:[%s1192_s4 + $0x100] sm:$0xff]  ;;  %v949_v53 = vld [vmem:[%s1468_s0 + $0x14] ss:$8 sps:$4 sm:$0xff]   ;;  %v954_v56 = vld [vmem:[%s1468_s0 + $0x50] ss:$8 sps:$4 sm:$0xff]   ;;  %s1414_s4 = scalar_lea.hbm %s1471_s3, %s841_s8 }
  0x49   : > { %511 = vmatprep.subr.bf16.mxu0 %v274_v48  ;;  %849 = vmatprep.subr.bf16.mxu1 %v274_v48  ;;  %v336_v48 = vld [vmem:[%s1469_s1 + $0x78] sm:$0xff]  ;;  %v289_v50 = vpack.c.bf16 %v243_v47, %v241_v46  ;;  %v959_v59 = vld [vmem:[%s1468_s0 + $0x20] ss:$8 sps:$4 sm:$0xff]  }
  0x4a   : > { %384 = vperm.xlu1 %942, %v330_v26   ;;  %v951_v54 = vld [vmem:[%s1468_s0 + $0x54] ss:$8 sps:$4 sm:$0xff]   ;;  %v960_v60 = vld [vmem:[%s1468_s0 + $0x60] ss:$8 sps:$4 sm:$0xff]   ;;  %v965_v63 = vld [vmem:[%s1468_s0 + $0x30] ss:$8 sps:$4 sm:$0xff]  }
  0x4b   : > { %379 = vperm.xlu0 %941, %v329_v27   ;;  %v963_v62 = vld [vmem:[%s1468_s0 + $0x74] ss:$8 sps:$4 sm:$0xff]   ;;  %v966_v0 = vld [vmem:[%s1468_s0 + $0x70] ss:$8 sps:$4 sm:$0xff]  }
  0x4c   : > { %512 = vmatpush1.bf16.msra.mxu0 %v273_v52  ;;  %865 = vmatpush1.bf16.msra.mxu1 %v273_v52  ;;  %v946_v52 = vld [vmem:[%s1468_s0 + $0x40] ss:$8 sps:$4 sm:$0xff]  }
  0x4d   : > { %513 = vmatprep.subr.bf16.mxu0 %v304_v55  ;;  %850 = vmatprep.subr.bf16.mxu1 %v304_v55  ;;  %v953_v55 = vld [vmem:[%s1468_s0 + $0x10] ss:$8 sps:$4 sm:$0xff]  }
  0x4e   : > { %394 = vperm.xlu1 %942, %v332_v34  }
  0x4f   : > { %389 = vperm.xlu0 %941, %v331_v35  }
  0x50   : > { %514 = vmatpush2.bf16.msra.mxu0 %v303_v58  ;;  %866 = vmatpush2.bf16.msra.mxu1 %v303_v58  ;;  %v957_v58 = vld [vmem:[%s1468_s0 + $0x64] ss:$8 sps:$4 sm:$0xff]  }
  0x51   : > { %515 = vmatprep.subr.bf16.mxu0 %v302_v61  ;;  %851 = vmatprep.subr.bf16.mxu1 %v302_v61  ;;  %v961_v61 = vld [vmem:[%s1468_s0 + $0x34] ss:$8 sps:$4 sm:$0xff]  }
  0x52   : > { %404 = vperm.xlu1 %942, %v334_v42  }
  0x53   : > { %399 = vperm.xlu0 %941, %v333_v43  }
  0x54   : > { %516 = vmatpush2.bf16.msra.mxu0 %v301_v4  ;;  %867 = vmatpush2.bf16.msra.mxu1 %v301_v4 }
  0x55   : > { %517 = vmatprep.subr.bf16.mxu0 %v300_v5  ;;  %852 = vmatprep.subr.bf16.mxu1 %v300_v5 }
  0x56   : > { %414 = vperm.xlu1 %942, %v336_v48  }
  0x57   : > { %409 = vperm.xlu0 %941, %v335_v49  }
  0x58   : > { %518 = vmatpush2.bf16.msra.mxu0 %v299_v12  ;;  %868 = vmatpush2.bf16.msra.mxu1 %v299_v12 }
  0x59   : > { %519 = vmatprep.subr.bf16.mxu0 %v298_v13  ;;  %853 = vmatprep.subr.bf16.mxu1 %v298_v13 }
  0x5c   : > { %520 = vmatpush2.bf16.msra.mxu0 %v297_v20  ;;  %869 = vmatpush2.bf16.msra.mxu1 %v297_v20 }
  0x5d   : > { %521 = vmatprep.subr.bf16.mxu0 %v296_v21  ;;  %854 = vmatprep.subr.bf16.mxu1 %v296_v21 }
  0x60   : > { %522 = vmatpush2.bf16.msra.mxu0 %v295_v28  ;;  %870 = vmatpush2.bf16.msra.mxu1 %v295_v28 }
  0x61   : > { %523 = vmatprep.subr.bf16.mxu0 %v294_v29  ;;  %855 = vmatprep.subr.bf16.mxu1 %v294_v29 }
  0x64   : > { %524 = vmatpush2.bf16.msra.mxu0 %v293_v36  ;;  %871 = vmatpush2.bf16.msra.mxu1 %v293_v36 }
  0x65   : > { %525 = vmatprep.subr.bf16.mxu0 %v292_v37  ;;  %856 = vmatprep.subr.bf16.mxu1 %v292_v37 }
  0x68   : > { %526 = vmatpush2.bf16.msra.mxu0 %v291_v44  ;;  %872 = vmatpush2.bf16.msra.mxu1 %v291_v44 }
  0x69   : > { %527 = vmatprep.subr.bf16.mxu0 %v290_v45  ;;  %857 = vmatprep.subr.bf16.mxu1 %v290_v45 }
  0x6c   : > { %528 = vmatpush2.bf16.msra.mxu0 %v289_v50  ;;  %873 = vmatpush2.bf16.msra.mxu1 %v289_v50 }
  0x6f   : > { %530 = vmatmul.mubr.bf16.vlgmr.msra.gmra.mxu0 %v943_v51  ;;  %570 = vmatmul.mubr.bf16.vlgmr.msra.gmra.mxu1 %v946_v52 }
  0x70   : > { %539 = vmatprep.mubr.bf16.mxu0 %v949_v53  ;;  %579 = vmatprep.mubr.bf16.mxu1 %v951_v54 }
  0x77   : > { %540 = vmatmul.mubr.bf16.gmra.mxu0 %v953_v55  ;;  %580 = vmatmul.mubr.bf16.gmra.mxu1 %v954_v56 }
  0x78   : > { %549 = vmatprep.mubr.bf16.mxu0 %v955_v57  ;;  %589 = vmatprep.mubr.bf16.mxu1 %v957_v58 }
  0x7f   : > { %550 = vmatmul.mubr.bf16.gmra.mxu0 %v959_v59  ;;  %590 = vmatmul.mubr.bf16.gmra.mxu1 %v960_v60 }
  0x80   : > { %559 = vmatprep.mubr.bf16.mxu0 %v961_v61  ;;  %599 = vmatprep.mubr.bf16.mxu1 %v963_v62 }
  0x87   : > { %560 = vmatmul.mubr.bf16.gmra.mxu0 %v965_v63  ;;  %600 = vmatmul.mubr.bf16.gmra.mxu1 %v966_v0 }
  0xb5   : > { %v350_v2 = vpop.permute.xlu1 %349 }
  0xb6   : > { %v340_v1 = vpop.permute.xlu0 %339 }
  0xb9   : > { %v1358_v4 = vpop.permute.xlu1 %354 }
  0xba   : > { %v345_v3 = vpop.permute.xlu0 %344 }
  0xbd   : > { %v1362_v6 = vpop.permute.xlu1 %364 }
  0xbe   : > { %v1360_v5 = vpop.permute.xlu0 %359 }
  0xc1   : > { %v1366_v8 = vpop.permute.xlu1 %374 }
  0xc2   : > { %v1364_v7 = vpop.permute.xlu0 %369 }
  0xc5   : > { %v385_v22 = vpop.permute.xlu1 %384 }
  0xc6   : > { %v380_v9 = vpop.permute.xlu0 %379 }
  0xc9   : > { %v395_v48 = vpop.permute.xlu1 %394 }
  0xca   : > { %v390_v31 = vpop.permute.xlu0 %389 }
 0x12f   : > { %v531_v10 = vpop.f32.mrf.mxu0  ;;  %v571_v11 = vpop.f32.mrf.mxu1 }
 0x130   : > { %v532_v12 = vadd.f32 %v531_v10, %v340_v1  ;;  %v572_v13 = vadd.f32 %v571_v11, %v380_v9 }
 0x131   : > { %v533_v14 = vpop.f32.mrf.mxu0  ;;  %v573_v15 = vpop.f32.mrf.mxu1 }
 0x132   : > { %v610_v16 = vmul.f32 0.2, %v532_v12  ;;  %v626_v17 = vmul.f32 0.2, %v572_v13  ;;  %v534_v18 = vadd.f32 %v533_v14, %v340_v1  ;;  %v574_v19 = vadd.f32 %v573_v15, %v380_v9  ;;  %v400_v14 = vpop.permute.xlu0 %399 }
 0x133   : > { %v535_v20 = vpop.f32.mrf.mxu0  ;;  %v575_v21 = vpop.f32.mrf.mxu1 }
 0x134   : > { %v642_v23 = vmax.f32 %v532_v12, %v610_v16  ;;  %v658_v24 = vmax.f32 %v572_v13, %v626_v17  ;;  %v611_v25 = vmul.f32 0.2, %v534_v18  ;;  %v627_v26 = vmul.f32 0.2, %v574_v19 }
 0x135   : > { %v536_v27 = vadd.f32 %v535_v20, %v345_v3  ;;  %v576_v28 = vadd.f32 %v575_v21, %v385_v22  ;;  %v537_v29 = vpop.f32.mrf.mxu0  ;;  %v577_v30 = vpop.f32.mrf.mxu1 }
 0x136   : > { %674 = vst [vmem:[%s1369_s7] sm:$0xff] %v642_v23  ;;  %690 = vst [vmem:[%s1369_s7 + $0x80] sm:$0xff] %v658_v24  ;;  %v643_v32 = vmax.f32 %v534_v18, %v611_v25  ;;  %v659_v33 = vmax.f32 %v574_v19, %v627_v26  ;;  %v538_v34 = vadd.f32 %v537_v29, %v345_v3 }
 0x137   : > { %v578_v35 = vadd.f32 %v577_v30, %v385_v22  ;;  %v612_v36 = vmul.f32 0.2, %v536_v27  ;;  %v628_v37 = vmul.f32 0.2, %v576_v28  ;;  %v541_v38 = vpop.f32.mrf.mxu0  ;;  %v581_v39 = vpop.f32.mrf.mxu1 }
 0x138   : > { %675 = vst [vmem:[%s1369_s7 + $0x8] sm:$0xff] %v643_v32  ;;  %691 = vst [vmem:[%s1369_s7 + $0x88] sm:$0xff] %v659_v33  ;;  %v613_v40 = vmul.f32 0.2, %v538_v34  ;;  %v542_v42 = vadd.f32 %v541_v38, %v350_v2  ;;  %v582_v43 = vadd.f32 %v581_v39, %v390_v31  ;;  %v405_v22 = vpop.permute.xlu1 %404  ;;  %v410_v38 = vpop.permute.xlu0 %409 }
 0x139   : > { %v629_v41 = vmul.f32 0.2, %v578_v35  ;;  %v644_v44 = vmax.f32 %v536_v27, %v612_v36  ;;  %v660_v45 = vmax.f32 %v576_v28, %v628_v37  ;;  %v543_v46 = vpop.f32.mrf.mxu0  ;;  %v583_v47 = vpop.f32.mrf.mxu1 }
 0x13a   : > { %v645_v49 = vmax.f32 %v538_v34, %v613_v40  ;;  %v614_v51 = vmul.f32 0.2, %v542_v42  ;;  %v630_v52 = vmul.f32 0.2, %v582_v43  ;;  %v544_v53 = vadd.f32 %v543_v46, %v350_v2 }
 0x13b   : > { %v661_v50 = vmax.f32 %v578_v35, %v629_v41  ;;  %676 = vst [vmem:[%s1369_s7 + $0x10] sm:$0xff] %v644_v44  ;;  %692 = vst [vmem:[%s1369_s7 + $0x90] sm:$0xff] %v660_v45  ;;  %v584_v54 = vadd.f32 %v583_v47, %v390_v31  ;;  %v545_v55 = vpop.f32.mrf.mxu0  ;;  %v585_v56 = vpop.f32.mrf.mxu1 }
 0x13c   : > { %677 = vst [vmem:[%s1369_s7 + $0x18] sm:$0xff] %v645_v49  ;;  %v646_v57 = vmax.f32 %v542_v42, %v614_v51  ;;  %v662_v58 = vmax.f32 %v582_v43, %v630_v52  ;;  %v546_v59 = vadd.f32 %v545_v55, %v1358_v4  ;;  %v586_v60 = vadd.f32 %v585_v56, %v395_v48 }
 0x13d   : > { %693 = vst [vmem:[%s1369_s7 + $0x98] sm:$0xff] %v661_v50  ;;  %v615_v61 = vmul.f32 0.2, %v544_v53  ;;  %v631_v62 = vmul.f32 0.2, %v584_v54  ;;  %v547_v63 = vpop.f32.mrf.mxu0  ;;  %v587_v0 = vpop.f32.mrf.mxu1 }
 0x13e   : > { %678 = vst [vmem:[%s1369_s7 + $0x20] sm:$0xff] %v646_v57  ;;  %694 = vst [vmem:[%s1369_s7 + $0xa0] sm:$0xff] %v662_v58  ;;  %v616_v1 = vmul.f32 0.2, %v546_v59  ;;  %v632_v2 = vmul.f32 0.2, %v586_v60  ;;  %v548_v3 = vadd.f32 %v547_v63, %v1358_v4  ;;  %v588_v9 = vadd.f32 %v587_v0, %v395_v48 }
 0x13f   : > { %v647_v10 = vmax.f32 %v544_v53, %v615_v61  ;;  %v663_v11 = vmax.f32 %v584_v54, %v631_v62  ;;  %v551_v12 = vpop.f32.mrf.mxu0  ;;  %v591_v13 = vpop.f32.mrf.mxu1 }
 0x140   : > { %v648_v15 = vmax.f32 %v546_v59, %v616_v1  ;;  %v664_v16 = vmax.f32 %v586_v60, %v632_v2  ;;  %v617_v17 = vmul.f32 0.2, %v548_v3  ;;  %v633_v18 = vmul.f32 0.2, %v588_v9  ;;  %v415_v62 = vpop.permute.xlu1 %414 }
 0x141   : > { %679 = vst [vmem:[%s1369_s7 + $0x28] sm:$0xff] %v647_v10  ;;  %695 = vst [vmem:[%s1369_s7 + $0xa8] sm:$0xff] %v663_v11  ;;  %v552_v19 = vadd.f32 %v551_v12, %v1360_v5  ;;  %v592_v20 = vadd.f32 %v591_v13, %v400_v14  ;;  %v553_v4 = vpop.f32.mrf.mxu0  ;;  %v593_v21 = vpop.f32.mrf.mxu1 }
 0x142   : > { %680 = vst [vmem:[%s1369_s7 + $0x30] sm:$0xff] %v648_v15  ;;  %696 = vst [vmem:[%s1369_s7 + $0xb0] sm:$0xff] %v664_v16  ;;  %v649_v23 = vmax.f32 %v548_v3, %v617_v17  ;;  %v665_v24 = vmax.f32 %v588_v9, %v633_v18  ;;  %v554_v25 = vadd.f32 %v553_v4, %v1360_v5 }
 0x143   : > { %v594_v26 = vadd.f32 %v593_v21, %v400_v14  ;;  %v618_v27 = vmul.f32 0.2, %v552_v19  ;;  %v634_v28 = vmul.f32 0.2, %v592_v20  ;;  %v555_v29 = vpop.f32.mrf.mxu0  ;;  %v595_v30 = vpop.f32.mrf.mxu1 }
 0x144   : > { %681 = vst [vmem:[%s1369_s7 + $0x38] sm:$0xff] %v649_v23  ;;  %697 = vst [vmem:[%s1369_s7 + $0xb8] sm:$0xff] %v665_v24  ;;  %v619_v31 = vmul.f32 0.2, %v554_v25  ;;  %v556_v33 = vadd.f32 %v555_v29, %v1362_v6  ;;  %v596_v34 = vadd.f32 %v595_v30, %v405_v22 }
 0x145   : > { %v635_v32 = vmul.f32 0.2, %v594_v26  ;;  %v650_v35 = vmax.f32 %v552_v19, %v618_v27  ;;  %v666_v36 = vmax.f32 %v592_v20, %v634_v28  ;;  %v557_v37 = vpop.f32.mrf.mxu0  ;;  %v597_v5 = vpop.f32.mrf.mxu1 }
 0x146   : > { %v651_v39 = vmax.f32 %v554_v25, %v619_v31  ;;  %v620_v41 = vmul.f32 0.2, %v556_v33  ;;  %v636_v42 = vmul.f32 0.2, %v596_v34  ;;  %v558_v43 = vadd.f32 %v557_v37, %v1362_v6 }
 0x147   : > { %v667_v40 = vmax.f32 %v594_v26, %v635_v32  ;;  %682 = vst [vmem:[%s1369_s7 + $0x40] sm:$0xff] %v650_v35  ;;  %698 = vst [vmem:[%s1369_s7 + $0xc0] sm:$0xff] %v666_v36  ;;  %v598_v44 = vadd.f32 %v597_v5, %v405_v22  ;;  %v561_v45 = vpop.f32.mrf.mxu0  ;;  %v601_v46 = vpop.f32.mrf.mxu1 }
 0x148   : > { %683 = vst [vmem:[%s1369_s7 + $0x48] sm:$0xff] %v651_v39  ;;  %v652_v47 = vmax.f32 %v556_v33, %v620_v41  ;;  %v668_v48 = vmax.f32 %v596_v34, %v636_v42  ;;  %v562_v49 = vadd.f32 %v561_v45, %v1364_v7  ;;  %v602_v50 = vadd.f32 %v601_v46, %v410_v38 }
 0x149   : > { %699 = vst [vmem:[%s1369_s7 + $0xc8] sm:$0xff] %v667_v40  ;;  %v621_v51 = vmul.f32 0.2, %v558_v43  ;;  %v637_v52 = vmul.f32 0.2, %v598_v44  ;;  %v563_v53 = vpop.f32.mrf.mxu0  ;;  %v603_v54 = vpop.f32.mrf.mxu1 }
 0x14a   : > { %684 = vst [vmem:[%s1369_s7 + $0x50] sm:$0xff] %v652_v47  ;;  %700 = vst [vmem:[%s1369_s7 + $0xd0] sm:$0xff] %v668_v48  ;;  %v622_v55 = vmul.f32 0.2, %v562_v49  ;;  %v638_v6 = vmul.f32 0.2, %v602_v50  ;;  %v564_v56 = vadd.f32 %v563_v53, %v1364_v7  ;;  %v604_v57 = vadd.f32 %v603_v54, %v410_v38 }
 0x14b   : > { %v653_v58 = vmax.f32 %v558_v43, %v621_v51  ;;  %v669_v59 = vmax.f32 %v598_v44, %v637_v52  ;;  %v565_v60 = vpop.f32.mrf.mxu0  ;;  %v605_v61 = vpop.f32.mrf.mxu1 }
 0x14c   : > { %v654_v63 = vmax.f32 %v562_v49, %v622_v55  ;;  %v670_v0 = vmax.f32 %v602_v50, %v638_v6  ;;  %v623_v1 = vmul.f32 0.2, %v564_v56  ;;  %v639_v2 = vmul.f32 0.2, %v604_v57 }
 0x14d   : > { %685 = vst [vmem:[%s1369_s7 + $0x58] sm:$0xff] %v653_v58  ;;  %701 = vst [vmem:[%s1369_s7 + $0xd8] sm:$0xff] %v669_v59  ;;  %v566_v7 = vadd.f32 %v565_v60, %v1366_v8  ;;  %v606_v3 = vadd.f32 %v605_v61, %v415_v62  ;;  %v567_v9 = vpop.f32.mrf.mxu0  ;;  %v607_v10 = vpop.f32.mrf.mxu1 }
 0x14e   : > { %686 = vst [vmem:[%s1369_s7 + $0x60] sm:$0xff] %v654_v63  ;;  %702 = vst [vmem:[%s1369_s7 + $0xe0] sm:$0xff] %v670_v0  ;;  %v655_v11 = vmax.f32 %v564_v56, %v623_v1  ;;  %v671_v12 = vmax.f32 %v604_v57, %v639_v2  ;;  %v568_v13 = vadd.f32 %v567_v9, %v1366_v8 }
 0x14f   : > { %v608_v14 = vadd.f32 %v607_v10, %v415_v62  ;;  %v624_v15 = vmul.f32 0.2, %v566_v7  ;;  %v640_v16 = vmul.f32 0.2, %v606_v3 }
 0x150   : > { %687 = vst [vmem:[%s1369_s7 + $0x68] sm:$0xff] %v655_v11  ;;  %703 = vst [vmem:[%s1369_s7 + $0xe8] sm:$0xff] %v671_v12  ;;  %v625_v17 = vmul.f32 0.2, %v568_v13 }
 0x151   : > { %v641_v18 = vmul.f32 0.2, %v608_v14  ;;  %v656_v19 = vmax.f32 %v566_v7, %v624_v15  ;;  %v672_v20 = vmax.f32 %v606_v3, %v640_v16 }
 0x152   : > { %v657_v8 = vmax.f32 %v568_v13, %v625_v17 }
 0x153   : > { %v673_v4 = vmax.f32 %v608_v14, %v641_v18  ;;  %688 = vst [vmem:[%s1369_s7 + $0x70] sm:$0xff] %v656_v19  ;;  %704 = vst [vmem:[%s1369_s7 + $0xf0] sm:$0xff] %v672_v20 }
 0x154   : > { %689 = vst [vmem:[%s1369_s7 + $0x78] sm:$0xff] %v657_v8 }
 0x155   : > { %705 = vst [vmem:[%s1369_s7 + $0xf8] sm:$0xff] %v673_v4 }
 0x156   : > { %1008 = shalt.err (!%p1005_p6)
}
 0x157   : > { %s1009_s23 = scalar_lea.hbm %s1414_s4, 4096  ;;  %s1013_s24 = scalar_lea.hbm %s1471_s3, 8192 }
 0x158   : > { %p1010_p7 = scmp.ne.s32.totalorder %s1414_s4, %s1009_s23  ;;  %p1014_p13 = scmp.lt.s32.totalorder %s1414_s4, %s1471_s3 }
 0x159   : > { %p1015_p2 = scmp.lt.s32.totalorder %s1013_s24, %s1009_s23 }
 0x15a   : > { %p1011_p10 = pnand %p1010_p7, %p1155_p9 }
 0x15b   : > { %p1016_p8 = por %p1015_p2, %p1014_p13 }
 0x15c   : > { %p1012_p4 = pneg %p1011_p10 }
 0x15e   : > { %p1017_p12 = pnand %p1016_p8, %p1012_p4 }
 0x160   : > { %1020 = shalt.err (!%p1017_p12)
}
 0x161   : > { %s1082_s7 = smov 256   ;;  %s1083_s8 = smov 16  }
 0x162   : > { %876 = dma.vmem_to_hbm [thread:$0]  (%p1155_p9), %s1416_s9, 4096, %s1414_s4, %s707_s15, %s1082_s7, %s1082_s7, %s1083_s8  }
 0x163 PF: > { %s737_s10 = sand.u32 1, %s1055_s12   ;;  %p1477_p0 = scmp.ge.s32.totalorder %s1075_s17, 2 }
 0x164   : > { %s738_s11 = scalar_lea.sflag [#allocation4], %s737_s10 }
 0x165   : > { %p883_p1 = pnand %p1477_p0, %p1162_p11 }
 0x167   : > { %p884_p3 = pneg %p883_p1 }
 0x169   : > { %1050 = dma.done.wait (%p884_p3), %s738_s11, 4096  }
 0x16a   : > { %1052 = vsyncadd (%p884_p3), %s738_s11, 4294963200  ;;  %s19_s17 = sadd.s32 1, %s1075_s17   ;;  %s1478_s12 = smov %s1059_s13 }
 0x16b   : > { %p16_p5 = scmp.ge.s32.totalorder %s19_s17, 4   ;;  %s1479_s13 = smov %s1063_s14 }
 0x16c   : > { %s1480_s14 = smov %s1160_s26  ;;  %s1481_s15 = smov %s1071_s16 }
 0x16d   : > { %s1482_s16 = smov %s1484_s20  ;;  %18 = sbr.rel (!%p16_p5) target bundleno = 6 (0x6), region = 77 }
 0x172   :  { %743 = vsyncpa [#allocation3], 1 }
 0x173   :  { %745 = vsyncpa [#allocation3 + $0x1], 1 }
 0x174   :  { %746 = vsyncpa [#allocation4], 1 }
 0x175   :  { %748 = vsyncpa [#allocation4 + $0x1], 1 }

</bundles_post_ra>
